<compile_context>
chip_gen: v5e
topology: v5e:2x2
jax: 0.10.0
libtpu: 0.0.40
codegen_flags: <defaults>
</compile_context>

<pallas_src>
import functools

import jax
import jax.numpy as jnp
from jax.experimental import pallas as pl
from jax.experimental.pallas import tpu as pltpu

_LANE = 128
_SUBLANE = 16  # multiple of 16 covers both f32 (8) and bf16 (16) sublane packing

_TILE_TARGET_BYTES = 2 * 1024 * 1024           # ~2 MiB streaming tiles
_RESIDENT_TILE_LIMIT_BYTES = 6 * 1024 * 1024   # single-tile path if slab fits


def _round_up(x, m):
    return (x + m - 1) // m * m


def _af_kernel(x_ref, snr_ref, params_ref, o_ref, acc_ref, gate_ref, *,
               inv_count, rows_total, tile_rows, mask_rows):
    """Two-phase kernel over grid (phase, tile).

    x_ref:      (tr, 128) tile of the flattened input (caller dtype), VMEM
    snr_ref:    (1,)  f32, SMEM
    params_ref: (5,)  f32, SMEM  -> [w1_0, w1_1, b1, w2, b2]
    o_ref:      (tr, 128) output tile (caller dtype), VMEM
    acc_ref:    (1, 128) f32 VMEM scratch - running per-lane partial sums
    gate_ref:   (1, 128) f32 VMEM scratch - gate broadcast across lanes
    """
    phase = pl.program_id(0)
    tile = pl.program_id(1)

    @pl.when(jnp.logical_and(phase == 0, tile == 0))
    def _init():
        acc_ref[...] = jnp.zeros_like(acc_ref)

    @pl.when(phase == 0)
    def _reduce():
        x = x_ref[...].astype(jnp.float32)
        if mask_rows:
            # Last grid block is partial: rows >= rem hold unspecified data
            # (Pallas edge-block read padding), so zero them before summing.
            rem = rows_total - tile * tile_rows
            row_ids = jax.lax.broadcasted_iota(jnp.int32, x.shape, 0)
            x = jnp.where(row_ids < rem, x, 0.0)
        # (tr, 128) -> (1, 128): sublane reduce, hidden under the DMAs.
        # TODO(synk): an (8,128) accumulator + VPU-only adds would keep the
        # XLU slot clear; perf-neutral here (DMA-bound), so kept simple.
        acc_ref[...] += jnp.sum(x, axis=0, keepdims=True)

    @pl.when(jnp.logical_and(phase == 1, tile == 0))
    def _gate():
        total = jnp.sum(acc_ref[...])          # final cross-lane reduce
        mean = total * inv_count               # zero lane-padding does not bias it
        snr = snr_ref[0]
        h = params_ref[0] * mean + params_ref[1] * snr + params_ref[2]  # Linear(2,1)
        h = jnp.maximum(h, 0.0)                                         # ReLU
        h = params_ref[3] * h + params_ref[4]                           # Linear(1,1)
        g = 1.0 / (1.0 + jnp.exp(-h))                                   # Sigmoid
        gate_ref[...] = jnp.full(gate_ref.shape, g, dtype=jnp.float32)

    @pl.when(phase == 1)
    def _scale():
        x = x_ref[...]
        if x.dtype == jnp.float32:
            o_ref[...] = (x * gate_ref[...]).astype(o_ref.dtype)
        else:
            # bf16 (etc.): multiply natively in the I/O dtype; the gate is cast
            # once per tile.  Halves VALU ops / vreg pressure on v6e/v7x.
            o_ref[...] = (x * gate_ref[...].astype(x.dtype)).astype(o_ref.dtype)


def af_module_pallas(x_nchw, snr, params, *, block_rows=None):
    """AF_Module forward.

    x_nchw: (1, 1, H, W) array (f32 or bf16); snr: scalar / (1,); params: (5,)
    flat [w1_0, w1_1, b1, w2, b2].  Returns an array of the same shape/dtype.
    `block_rows` optionally overrides the tile-row heuristic (testing).
    """
    assert x_nchw.ndim == 4 and x_nchw.shape[0] == 1 and x_nchw.shape[1] == 1, (
        "AF_Module hard-codes view(1, 1): requires N == C == 1")
    H, W = x_nchw.shape[2], x_nchw.shape[3]
    total = H * W
    dtype = x_nchw.dtype
    itemsize = jnp.dtype(dtype).itemsize

    # Lane-dense view: (rows, 128).  Free reshape when total % 128 == 0;
    # otherwise pad only the sub-128-element lane tail with zeros.
    rows = pl.cdiv(total, _LANE)
    pad = rows * _LANE - total

    x_flat = x_nchw.reshape(-1)
    if pad:
        x_flat = jnp.pad(x_flat, (0, pad))
    x2d = x_flat.reshape(rows, _LANE)

    # Tile-row selection (dtype-aware so the DMA chunk size stays constant).
    row_bytes = _LANE * itemsize
    slab_bytes = rows * row_bytes
    if block_rows is not None:
        tr = max(_SUBLANE, _round_up(block_rows, _SUBLANE))
    elif slab_bytes <= _RESIDENT_TILE_LIMIT_BYTES:
        # Whole slab fits comfortably in VMEM: one tile, input fetched once
        # (its block index never changes across the two phases).
        tr = _round_up(rows, _SUBLANE)
    else:
        tr = _round_up(_TILE_TARGET_BYTES // row_bytes, _SUBLANE)
    tr = min(tr, _round_up(rows, _SUBLANE))
    num_tiles = pl.cdiv(rows, tr)
    mask_rows = (rows % tr) != 0  # last block partial -> mask rows in reduce

    # Explicit scoped-VMEM budget: 2x(in)+2x(out) buffers + margin.  Always
    # <= ~26 MiB, safe on v5e/v6e (128 MiB physical) and v7x (64 MiB physical).
    tile_bytes = tr * row_bytes
    vmem_limit = int(max(16 * 1024 * 1024, 4 * tile_bytes + 2 * 1024 * 1024))

    snr_arr = jnp.asarray(snr, dtype=jnp.float32).reshape(-1)[:1]
    params_arr = jnp.asarray(params, dtype=jnp.float32).reshape(-1)

    kernel = functools.partial(
        _af_kernel,
        inv_count=1.0 / float(total),
        rows_total=rows,
        tile_rows=tr,
        mask_rows=mask_rows)

    # Mem-bound custom call: 2 reads + 1 write streaming, 1 read + 1 write
    # when resident.  Hint the scheduler.
    passes = 3 if num_tiles > 1 else 2
    cost = pl.CostEstimate(
        flops=2 * total + 16,
        transcendentals=1,
        bytes_accessed=int(passes * rows * _LANE * itemsize))

    out2d = pl.pallas_call(
        kernel,
        out_shape=jax.ShapeDtypeStruct((rows, _LANE), dtype),
        grid_spec=pltpu.PrefetchScalarGridSpec(
            num_scalar_prefetch=0,
            grid=(2, num_tiles),  # (phase, tile); phase-major iteration
            in_specs=[
                pl.BlockSpec((tr, _LANE), lambda p, t: (t, 0)),  # x tiles
                pl.BlockSpec(memory_space=pltpu.SMEM),           # snr scalar
                pl.BlockSpec(memory_space=pltpu.SMEM),           # MLP params
            ],
            # Phase 0 pins the output block index at 0 so nothing is written
            # back until the scale phase produces real data.  NOTE: this relies
            # on writeback-only-on-block-index-change semantics (block 0 is
            # fully overwritten at phase 1 / tile 0 before its first writeback).
            out_specs=pl.BlockSpec((tr, _LANE), lambda p, t: (t * p, 0)),
            scratch_shapes=[
                pltpu.VMEM((1, _LANE), jnp.float32),  # partial-sum accumulator
                pltpu.VMEM((1, _LANE), jnp.float32),  # broadcast gate
            ],
        ),
        compiler_params=pltpu.CompilerParams(
            # Both axes are sequential: phase 1 depends on all of phase 0, and
            # phase 0 carries the accumulator across tiles.
            dimension_semantics=("arbitrary", "arbitrary"),
            vmem_limit_bytes=vmem_limit),
        cost_estimate=cost,
    )(x2d, snr_arr, params_arr)

    out_flat = out2d.reshape(-1)
    if pad:
        out_flat = out_flat[:total]
    return out_flat.reshape(1, 1, H, W)


def _ref_forward(x_nchw, snr, params):
    """Pure-JAX reference of the PyTorch forward (for verification)."""
    xf = x_nchw.astype(jnp.float32)
    mean = jnp.mean(xf)
    snr_val = jnp.asarray(snr, jnp.float32).reshape(-1)[0]
    h = params[0] * mean + params[1] * snr_val + params[2]
    h = jnp.maximum(h, 0.0)
    h = params[3] * h + params[4]
    gate = jax.nn.sigmoid(h)
    return (xf * gate).astype(x_nchw.dtype)


if __name__ == "__main__":
    key = jax.random.PRNGKey(0)
    kx1, kx2, kx3, kx4, kw1, kb1, kw2, kb2 = jax.random.split(key, 8)

    # Deterministic parameter init (PyTorch Linear-style uniform bounds):
    #   dense1: Linear(2, 1) -> weight (1, 2), bias (1,);  bound = 1/sqrt(2)
    #   dense2: Linear(1, 1) -> weight (1, 1), bias (1,);  bound = 1
    b1_bound = 1.0 / jnp.sqrt(2.0)
    w1 = jax.random.uniform(kw1, (1, 2), minval=-b1_bound, maxval=b1_bound)
    b1 = jax.random.uniform(kb1, (1,), minval=-b1_bound, maxval=b1_bound)
    w2 = jax.random.uniform(kw2, (1, 1), minval=-1.0, maxval=1.0)
    b2 = jax.random.uniform(kb2, (1,), minval=-1.0, maxval=1.0)
    params = jnp.concatenate([w1.reshape(-1), b1, w2.reshape(-1), b2]).astype(jnp.float32)
    snr = jnp.array([5.0], dtype=jnp.float32)

    # 1) Aligned (H*W % 128 == 0): zero-copy reshape path, single resident tile.
    x1 = jax.random.normal(kx1, (1, 1, 16, 16), dtype=jnp.float32)
    o1 = jax.block_until_ready(af_module_pallas(x1, snr, params))
    r1 = _ref_forward(x1, snr, params)
    assert o1.shape == x1.shape and o1.dtype == x1.dtype
    assert jnp.allclose(o1, r1, atol=1e-5, rtol=1e-5)

    # 2) Unaligned total (small lane-tail pad) + forced multi-tile streaming
    #    with a partial last block (exercises the in-kernel row mask).
    x2 = jax.random.normal(kx2, (1, 1, 48, 100), dtype=jnp.float32)
    o2 = jax.block_until_ready(af_module_pallas(x2, snr, params, block_rows=16))
    r2 = _ref_forward(x2, snr, params)
    assert jnp.allclose(o2, r2, atol=1e-5, rtol=1e-5)

    # 3) bf16 I/O, aligned, forced multi-tile: native bf16 scale path with
    #    f32 accumulation inside the kernel.
    x3 = jax.random.normal(kx3, (1, 1, 64, 128), dtype=jnp.float32).astype(jnp.bfloat16)
    o3 = jax.block_until_ready(af_module_pallas(x3, snr, params, block_rows=16))
    r3 = _ref_forward(x3, snr, params)
    assert jnp.allclose(o3.astype(jnp.float32), r3.astype(jnp.float32),
                        atol=2e-2, rtol=2e-2)

    # 4) Tiny sub-vreg input (H*W < 128): single padded row, masked reduce.
    x4 = jax.random.normal(kx4, (1, 1, 8, 8), dtype=jnp.float32)
    o4 = jax.block_until_ready(af_module_pallas(x4, snr, params))
    r4 = _ref_forward(x4, snr, params)
    assert jnp.allclose(o4, r4, atol=1e-5, rtol=1e-5)

    print("KERNEL_OK")
</pallas_src>

<mosaic_0001>
module attributes {stable_mosaic.version = 11 : i64} {
  func.func @_af_kernel(%arg0: i32, %arg1: i32, %arg2: memref<16x128xf32, #tpu.memory_space<vmem>>, %arg3: memref<1xf32, #tpu.memory_space<smem>>, %arg4: memref<5xf32, #tpu.memory_space<smem>>, %arg5: memref<16x128xf32, #tpu.memory_space<vmem>>, %arg6: memref<1x128xf32, #tpu.memory_space<vmem>>, %arg7: memref<1x128xf32, #tpu.memory_space<vmem>>) attributes {dimension_semantics = [#tpu.dimension_semantics<arbitrary>, #tpu.dimension_semantics<arbitrary>], iteration_bounds = array<i64: 2, 1>, scalar_prefetch = 0 : i64, scratch_operands = 2 : i64, tpu.core_type = #tpu.core_type<tc>, window_params = [{transform_indices = @transform_0, window_bounds = array<i64: 16, 128>}, {transform_indices = @transform_1, window_bounds = array<i64: 1>}, {transform_indices = @transform_2, window_bounds = array<i64: 5>}, {transform_indices = @transform_3, window_bounds = array<i64: 16, 128>}]} {
    %c0_i32 = arith.constant 0 : i32
    %0 = arith.cmpi eq, %arg0, %c0_i32 : i32
    %c0_i32_0 = arith.constant 0 : i32
    %1 = arith.cmpi eq, %arg1, %c0_i32_0 : i32
    %2 = arith.andi %0, %1 : i1
    %3 = arith.extui %2 : i1 to i32
    %c0_i32_1 = arith.constant 0 : i32
    %4 = arith.cmpi ne, %3, %c0_i32_1 : i32
    scf.if %4 {
      %cst = arith.constant 0.000000e+00 : f32
      %16 = vector.broadcast %cst : f32 to vector<1x128xf32>
      %c0 = arith.constant 0 : index
      %c0_8 = arith.constant 0 : index
      %17 = vector.load %arg6[%c0, %c0_8] : memref<1x128xf32, #tpu.memory_space<vmem>>, vector<1x128xf32>
      tpu.vector_store %arg6[%c0, %c0_8], %16 {strides = array<i32>} : memref<1x128xf32, #tpu.memory_space<vmem>>, vector<1x128xf32>,
    } else {
    }
    %c0_i32_2 = arith.constant 0 : i32
    %5 = arith.cmpi eq, %arg0, %c0_i32_2 : i32
    %6 = arith.extui %5 : i1 to i32
    %c0_i32_3 = arith.constant 0 : i32
    %7 = arith.cmpi ne, %6, %c0_i32_3 : i32
    scf.if %7 {
      %c0 = arith.constant 0 : index
      %c0_8 = arith.constant 0 : index
      %16 = vector.load %arg2[%c0, %c0_8] : memref<16x128xf32, #tpu.memory_space<vmem>>, vector<16x128xf32>
      %c16_i32 = arith.constant 16 : i32
      %17 = arith.muli %arg1, %c16_i32 : i32
      %c2_i32 = arith.constant 2 : i32
      %18 = arith.subi %c2_i32, %17 : i32
      %19 = tpu.iota {dimensions = array<i32: 0>} : vector<16x128xi32>
      %20 = vector.broadcast %18 : i32 to vector<16x128xi32>
      %21 = arith.cmpi slt, %19, %20 : vector<16x128xi32>
      %cst = arith.constant 0.000000e+00 : f32
      %22 = vector.broadcast %cst : f32 to vector<16x128xf32>
      %23 = arith.select %21, %16, %22 : vector<16x128xi1>, vector<16x128xf32>
      %c0_9 = arith.constant 0 : index
      %c0_10 = arith.constant 0 : index
      %24 = vector.load %arg6[%c0_9, %c0_10] : memref<1x128xf32, #tpu.memory_space<vmem>>, vector<1x128xf32>
      %cst_11 = arith.constant dense<0.000000e+00> : vector<128xf32>
      %25 = vector.multi_reduction <add>, %23, %cst_11 [0] : vector<16x128xf32> to vector<128xf32>
      %26 = vector.shape_cast %25 : vector<128xf32> to vector<1x128xf32>
      %27 = arith.addf %24, %26 : vector<1x128xf32>
      %c0_12 = arith.constant 0 : index
      %c0_13 = arith.constant 0 : index
      %28 = vector.load %arg6[%c0_12, %c0_13] : memref<1x128xf32, #tpu.memory_space<vmem>>, vector<1x128xf32>
      tpu.vector_store %arg6[%c0_12, %c0_13], %27 {strides = array<i32>} : memref<1x128xf32, #tpu.memory_space<vmem>>, vector<1x128xf32>,
    } else {
    }
    %c1_i32 = arith.constant 1 : i32
    %8 = arith.cmpi eq, %arg0, %c1_i32 : i32
    %c0_i32_4 = arith.constant 0 : i32
    %9 = arith.cmpi eq, %arg1, %c0_i32_4 : i32
    %10 = arith.andi %8, %9 : i1
    %11 = arith.extui %10 : i1 to i32
    %c0_i32_5 = arith.constant 0 : i32
    %12 = arith.cmpi ne, %11, %c0_i32_5 : i32
    scf.if %12 {
      %c0 = arith.constant 0 : index
      %c0_8 = arith.constant 0 : index
      %16 = vector.load %arg6[%c0, %c0_8] : memref<1x128xf32, #tpu.memory_space<vmem>>, vector<1x128xf32>
      %17 = vector.shape_cast %16 : vector<1x128xf32> to vector<1x1x128xf32>
      %cst = arith.constant dense<0.000000e+00> : vector<1xf32>
      %18 = vector.multi_reduction <add>, %17, %cst [1, 2] : vector<1x1x128xf32> to vector<1xf32>
      %19 = vector.shape_cast %18 : vector<1xf32> to vector<1x1x1xf32>
      %20 = vector.extract %19[0, 0, 0] : f32 from vector<1x1x1xf32>
      %cst_9 = arith.constant 3.906250e-03 : f32
      %21 = arith.mulf %20, %cst_9 : f32
      %c0_10 = arith.constant 0 : index
      %22 = memref.load %arg3[%c0_10] : memref<1xf32, #tpu.memory_space<smem>>
      %c0_11 = arith.constant 0 : index
      %23 = memref.load %arg4[%c0_11] : memref<5xf32, #tpu.memory_space<smem>>
      %24 = arith.mulf %23, %21 : f32
      %c1 = arith.constant 1 : index
      %25 = memref.load %arg4[%c1] : memref<5xf32, #tpu.memory_space<smem>>
      %26 = arith.mulf %25, %22 : f32
      %27 = arith.addf %24, %26 : f32
      %c2 = arith.constant 2 : index
      %28 = memref.load %arg4[%c2] : memref<5xf32, #tpu.memory_space<smem>>
      %29 = arith.addf %27, %28 : f32
      %cst_12 = arith.constant 0.000000e+00 : f32
      %30 = arith.maximumf %29, %cst_12 : f32
      %c3 = arith.constant 3 : index
      %31 = memref.load %arg4[%c3] : memref<5xf32, #tpu.memory_space<smem>>
      %32 = arith.mulf %31, %30 : f32
      %c4 = arith.constant 4 : index
      %33 = memref.load %arg4[%c4] : memref<5xf32, #tpu.memory_space<smem>>
      %34 = arith.addf %32, %33 : f32
      %cst_13 = arith.constant 0.000000e+00 : f32
      %35 = arith.subf %cst_13, %34 : f32
      %36 = math.exp %35 : f32
      %cst_14 = arith.constant 1.000000e+00 : f32
      %37 = arith.addf %cst_14, %36 : f32
      %cst_15 = arith.constant 1.000000e+00 : f32
      %38 = arith.divf %cst_15, %37 : f32
      %39 = vector.broadcast %38 : f32 to vector<1x128xf32>
      %c0_16 = arith.constant 0 : index
      %c0_17 = arith.constant 0 : index
      %40 = vector.load %arg7[%c0_16, %c0_17] : memref<1x128xf32, #tpu.memory_space<vmem>>, vector<1x128xf32>
      tpu.vector_store %arg7[%c0_16, %c0_17], %39 {strides = array<i32>} : memref<1x128xf32, #tpu.memory_space<vmem>>, vector<1x128xf32>,
    } else {
    }
    %c1_i32_6 = arith.constant 1 : i32
    %13 = arith.cmpi eq, %arg0, %c1_i32_6 : i32
    %14 = arith.extui %13 : i1 to i32
    %c0_i32_7 = arith.constant 0 : i32
    %15 = arith.cmpi ne, %14, %c0_i32_7 : i32
    scf.if %15 {
      %c0 = arith.constant 0 : index
      %c0_8 = arith.constant 0 : index
      %16 = vector.load %arg2[%c0, %c0_8] : memref<16x128xf32, #tpu.memory_space<vmem>>, vector<16x128xf32>
      %c0_9 = arith.constant 0 : index
      %c0_10 = arith.constant 0 : index
      %17 = vector.load %arg7[%c0_9, %c0_10] : memref<1x128xf32, #tpu.memory_space<vmem>>, vector<1x128xf32>
      %18 = vector.broadcast %17 : vector<1x128xf32> to vector<16x128xf32>
      %19 = arith.mulf %16, %18 : vector<16x128xf32>
      %c0_11 = arith.constant 0 : index
      %c0_12 = arith.constant 0 : index
      %20 = vector.load %arg5[%c0_11, %c0_12] : memref<16x128xf32, #tpu.memory_space<vmem>>, vector<16x128xf32>
      tpu.vector_store %arg5[%c0_11, %c0_12], %19 {strides = array<i32>} : memref<16x128xf32, #tpu.memory_space<vmem>>, vector<16x128xf32>,
    } else {
    }
    return
  }
  func.func @transform_0(%arg0: i32, %arg1: i32) -> (i32, i32) {
    %c0_i32 = arith.constant 0 : i32
    %c0_i32_0 = arith.constant 0 : i32
    return %arg1, %c0_i32 : i32, i32
  }
  func.func @transform_1(%arg0: i32, %arg1: i32) -> i32 {
    %c0_i32 = arith.constant 0 : i32
    %c0_i32_0 = arith.constant 0 : i32
    return %c0_i32 : i32
  }
  func.func @transform_2(%arg0: i32, %arg1: i32) -> i32 {
    %c0_i32 = arith.constant 0 : i32
    %c0_i32_0 = arith.constant 0 : i32
    return %c0_i32 : i32
  }
  func.func @transform_3(%arg0: i32, %arg1: i32) -> (i32, i32) {
    %0 = arith.muli %arg1, %arg0 : i32
    %c0_i32 = arith.constant 0 : i32
    %c0_i32_0 = arith.constant 0 : i32
    return %0, %c0_i32 : i32, i32
  }
}

</mosaic_0001>

<bundles_post_ra>
// kernel: tpu_custom_call.1
= control target key start
LH: loop header
LB: loop body
LE: loop exit
PB: predicated region body
PF: predicated region fallthrough
CT: control target
= control target key end

     0   :  { %s659_s0 = inlined_call_operand.vmem [shape: f32[2,128], index: 0, kind: input, shape index: {}]   ;;  %s660_s1 = inlined_call_operand.<no memory space> [shape: f32[1], index: 1, kind: input, shape index: {}]   ;;  %s661_s2 = inlined_call_operand.hbm [shape: f32[5], index: 2, kind: input, shape index: {}]   ;;  %s662_s3 = inlined_call_operand.hbm [shape: f32[2,128], index: 3, kind: output, shape index: {}]  }
   0x1   :  { %8 = sst [smem:[#allocation4]] %s660_s1 }
   0x2   :  { %9 = vsyncpa [#allocation7], 0 }
   0x3   :  { %10 = vsyncpa [#allocation6], 0 }
   0x4   :  { %12 = vsyncpa [#allocation6 + $0x1], 0  ;;  %s602_s14 = smov 0   ;;  %s604_s15 = smov 0  }
   0x5   :  { %s606_s16 = smov 0  }
   0x6 LB: > { %s421_s1 = sadd.s32 4294967295, %s571_s16   ;;  %s422_s17 = sadd.s32 4294967294, %s571_s16   ;;  %s571_s16 = sphi %s606_s16, %s18_s16   ;;  %s567_s15 = sphi %s604_s15, %s664_s15   ;;  %s563_s14 = sphi %s602_s14, %s663_s14  }
   0x7   : > { %s30_s18 = sadd.s32 1, %s567_s15  ;;  %p423_p0 = scmp.ge.s32.totalorder %s571_s16, 1 }
   0x8   : > { %p32_p1 = scmp.ge.s32.totalorder %s30_s18, 2  ;;  %p131_p2 = scmp.lt.s32.totalorder %s571_s16, 3 }
   0x9   : > { %p463_p3 = scmp.eq.s32.totalorder %s421_s1, 0  ;;  %s159_s21 = sshll.u32 %s661_s2, 4  ;;  %s160_s21 = int_to_ptr.hbm [resolvable:$true] %s159_s21 }
   0xa   : > { %s666_s18 = smov (%p32_p1, %s30_s18), 0  ;;  %p132_p4 = pnand %p423_p0, %p131_p2 }
   0xb   : > { %s573_s22 = smov [#allocation5]  }
   0xc   : > { %p455_p5 = pneg %p132_p4  ;;  %172 = sbr.rel (%p132_p4) target bundleno = 407 (0x197), region = 32 }
   0xe   : > { %p456_p6 = pnand %p463_p3, %p455_p5 }
  0x10   : > { %458 = dma.hbm_to_smem (!%p456_p6), %s160_s21, 16, %s573_s22, [#allocation7]  }
  0x11   : > { %554 = dma.done.wait (%p463_p3), [#allocation7], 16  }
  0x12   : > { %556 = vsyncadd (%p463_p3), [#allocation7], 4294967280 }
  0x13   : > { %179 = sfence }
  0x14   : > { %p214_p7 = scmp.eq.s32.totalorder %s563_s14, 0 }
  0x15   : > { %v574_v0 = vmov (%p214_p7), 0.0  }
  0x16   : > { %219 = sbr.rel (!%p214_p7) target bundleno = 27 (0x1b), region = 40  ;;  %220 = vst [vmem:[#allocation2] sm:$0x1] (%p214_p7), %v574_v0 }
  0x1b PF: > { %p429_p8 = scmp.ne.s32.totalorder %s563_s14, 0 }
  0x1d   : > { %223 = sbr.rel (%p429_p8) target bundleno = 50 (0x32), region = 44 }
  0x22   : > { %v430_v1 = vld [vmem:[%s659_s0] sm:$0x3] }
  0x23   : > { %v238_v2 = vrot.slane %v430_v1, 4  ;;  %v236_v7 = vld [vmem:[#allocation2] sm:$0x1] }
  0x25   : > { %v239_v3 = vadd.f32 %v430_v1, %v238_v2 }
  0x27   : > { %v240_v4 = vrot.slane %v239_v3, 2 }
  0x29   : > { %v241_v5 = vadd.f32 %v240_v4, %v239_v3 }
  0x2b   : > { %v242_v6 = vrot.slane %v241_v5, 1 }
  0x2d   : > { %v243_v8 = vadd.f32 %v242_v6, %v241_v5 }
  0x2f   : > { %v244_v9 = vadd.f32 %v243_v8, %v236_v7 }
  0x31   : > { %245 = vst [vmem:[#allocation2] sm:$0x1] %v244_v9 }
  0x32 PF: > { %p246_p9 = scmp.eq.s32.totalorder %s563_s14, 1 }
  0x33   : > { %vm252_vm0 = vcmask (%p246_p9), 1040384   ;;  %s264_s25 = sld [smem:[#allocation4]] (%p246_p9)  ;;  %s575_s10 = smov (%p246_p9), 0.0  }
  0x34   : > { %250 = sbr.rel (!%p246_p9) target bundleno = 383 (0x17f), region = 48  ;;  %s432_s26 = sld [smem:[#allocation5 + $0x1]] (%p246_p9) }
  0x35   : > { %s265_s27 = sld [smem:[#allocation5]] (%p246_p9) }
  0x36   : > { %s433_s28 = sld [smem:[#allocation5 + $0x2]] (%p246_p9) }
  0x37   : > { %s434_s5 = sld [smem:[#allocation5 + $0x3]] (%p246_p9) }
  0x38   : > { %v251_v10 = vld [vmem:[#allocation2] sm:$0x1] (%p246_p9)  ;;  %s435_s7 = sld [smem:[#allocation5 + $0x4]] (%p246_p9) }
  0x39   : > { %v253_v11 = vsel %vm252_vm0, %v251_v10, 0.0 }
  0x3a   : > { %254 = vadd.xlane.f32.xlu0 %v253_v11  ;;  %s268_s30 = smul.f32 %s432_s26, %s264_s25 }
  0xad   : > { %v255_v12 = vpop.xlane.xlu0 %254 }
  0xae   : > { %v256_v13 = vrot.slane %v255_v12, 4 }
  0xb0   : > { %v257_v14 = vadd.f32 %v256_v13, %v255_v12 }
  0xb2   : > { %v258_v15 = vrot.slane %v257_v14, 2 }
  0xb4   : > { %v259_v16 = vadd.f32 %v258_v15, %v257_v14 }
  0xb6   : > { %v260_v17 = vrot.slane %v259_v16, 1 }
  0xb8   : > { %v261_v18 = vadd.f32 %v260_v17, %v259_v16 }
  0xba   : > { %443 = vpush %v261_v18 }
  0xeb   : > { %s444_s29 = spop %443 }
  0xec   : > { %s263_s4 = smul.f32 0.00390625, %s444_s29 }
  0xee   : > { %s266_s6 = smul.f32 %s265_s27, %s263_s4 }
  0xf0   : > { %s269_s8 = sadd.f32 %s268_s30, %s266_s6 }
  0xf2   : > { %s271_s9 = sadd.f32 %s433_s28, %s269_s8 }
  0xf4   : > { %s272_s11 = smax.f32 %s575_s10, %s271_s9 }
  0xf5   : > { %s274_s12 = smul.f32 %s434_s5, %s272_s11 }
  0xf7   : > { %s276_s13 = sadd.f32 %s435_s7, %s274_s12 }
  0xf9   : > { %s277_s19 = ssub.f32 0.0, %s276_s13 }
  0xfb   : > { %v278_v19 = vstv %s277_s19 }
  0xfc   : > { %v279_v20 = vmul.f32 1.442695, %v278_v19 }
  0xfe   : > { %497 = vpow2.f32 %v279_v20 }
 0x104   : > { %v498_v21 = vpop.eup %497 }
 0x105   : > { %445 = vpush %v498_v21 }
 0x136   : > { %s446_s20 = spop %445 }
 0x137   : > { %s282_s21 = sadd.f32 1.0, %s446_s20 }
 0x139   : > { %v283_v22 = vstv %s282_s21 }
 0x13a   : > { %499 = vrcp.f32 %v283_v22  ;;  %v295_v26 = vand.u32 2147483648, %v283_v22  ;;  %v293_v28 = vand.u32 2147483647, %v283_v22  ;;  %vm289_vm2 = vweird.f32 %v283_v22 }
 0x13c   : > { %v296_v30 = vor.u32 1.1754944e-38, %v295_v26  ;;  %vm294_vm4 = vcmp.eq.f32.partialorder %v293_v28, 8.507059e+37 }
 0x140   : > { %v500_v23 = vpop.eup %499 }
 0x141   : > { %v285_v24 = vmul.f32 %v500_v23, %v283_v22  ;;  %vm290_vm1 = vweird.f32 %v500_v23 }
 0x142   : > { %vm291_vm3 = vmor %vm289_vm2, %vm290_vm1 }
 0x143   : > { %v286_v25 = vsub.f32 1.0, %v285_v24 }
 0x145   : > { %v287_v27 = vmul.f32 %v500_v23, %v286_v25 }
 0x147   : > { %v288_v29 = vadd.f32 %v500_v23, %v287_v27 }
 0x149   : > { %v292_v31 = vsel %vm291_vm3, %v500_v23, %v288_v29 }
 0x14a   : > { %v297_v32 = vsel %vm294_vm4, %v296_v30, %v292_v31 }
 0x14b   : > { %447 = vpush %v297_v32 }
 0x17c   : > { %s448_s22 = spop %447 }
 0x17d   : > { %v299_v33 = vstv %s448_s22 }
 0x17e   : > { %300 = vst [vmem:[#allocation3] sm:$0x1] %v299_v33 }
 0x17f PF: > { %p436_p10 = scmp.ne.s32.totalorder %s563_s14, 1 }
 0x181   : > { %303 = sbr.rel (%p436_p10) target bundleno = 396 (0x18c), region = 52 }
 0x186   : > { %v304_v34 = vld [vmem:[%s659_s0] sm:$0xff]  ;;  %v305_v36 = vld [vmem:[%s659_s0 + $0x8] sm:$0xff] }
 0x187   : > { %v501_v35 = vld [vmem:[#allocation3] ss:$0 sm:$0xff] }
 0x188   : > { %v310_v37 = vmul.f32 %v501_v35, %v304_v34  ;;  %v311_v38 = vmul.f32 %v501_v35, %v305_v36 }
 0x18a   : > { %312 = vst [vmem:[#allocation8] sm:$0xff] %v310_v37 }
 0x18b   : > { %313 = vst [vmem:[#allocation8 + $0x8] sm:$0xff] %v311_v38 }
 0x18c PF: > { %p437_p11 = scmp.ne.s32.totalorder %s421_s1, 1 }
 0x18e   : > { %321 = sbr.rel (%p437_p11) target bundleno = 407 (0x197), region = 56 }
 0x193   : > { %328 = vsyncadd [#allocation6], 224  ;;  %s335_s28 = sshll.u32 %s662_s3, 4  ;;  %s576_s29 = smov [#allocation8]   ;;  %s336_s28 = int_to_ptr.hbm [resolvable:$true] %s335_s28 }
 0x194   : > { %s333_s30 = sshll.u32 %s576_s29, 4  ;;  %s577_s4 = smov 32   ;;  %s334_s30 = int_to_ptr.vmem [resolvable:$true] %s333_s30 }
 0x195   : > { %s578_s5 = smov 2  }
 0x196   : > { %341 = dma.vmem_to_hbm [thread:$0]  %s334_s30, 32, %s336_s28, [#allocation6], %s577_s4, %s577_s4, %s578_s5  }
 0x197 PF: > { %p465_p12 = scmp.ge.s32.totalorder %s571_s16, 2  ;;  %p466_p13 = scmp.eq.s32.totalorder %s422_s17, 1 }
 0x199   : > { %p460_p0 = pnand %p466_p13, %p465_p12 }
 0x19b   : > { %p461_p1 = pneg %p460_p0 }
 0x19d   : > { %558 = dma.done.wait (%p461_p1), [#allocation6], 256  }
 0x19e   : > { %560 = vsyncadd (%p461_p1), [#allocation6], 4294967040  ;;  %s18_s16 = sadd.s32 1, %s571_s16   ;;  %s663_s14 = smov %s567_s15 }
 0x19f   : > { %p15_p2 = scmp.ge.s32.totalorder %s18_s16, 4   ;;  %s664_s15 = smov %s666_s18 }
 0x1a1   :  { %17 = sbr.rel (!%p15_p2) target bundleno = 6 (0x6), region = 88 }
 0x1a6   :  { %357 = vsyncpa [#allocation6], 1 }
 0x1a7   :  { %359 = vsyncpa [#allocation6 + $0x1], 1 }
 0x1a8   :  { %360 = vsyncpa [#allocation7], 1 }
 0x1a9   :  { %362 = vsyncpa [#allocation7 + $0x1], 1 }

</bundles_post_ra>
